<compile_context>
chip_gen: v7x
topology: tpu7x:2x2x1
jax: 0.10.0
libtpu: 0.0.40
codegen_flags: <defaults>
</compile_context>

<pallas_src>
import functools

import jax
import jax.numpy as jnp
from jax.experimental import pallas as pl
from jax.experimental.pallas import tpu as pltpu


def _ceil_to(v, m):
    return (v + m - 1) // m * m


def _pick_tiling(n):
    """Pad N to a multiple of 128 and pick (tm, tk) tiles that divide it.

    Tiles are capped at 1024 rows; the row tile additionally leaves >= 2 row
    tiles whenever the padded graph has more than one 128-row block so the
    'parallel' grid axis can split across v7x's two TensorCores.
    """
    n_pad = _ceil_to(max(n, 1), 128)
    blocks = n_pad // 128

    def best_divisor(cap):
        cap = max(1, min(cap, blocks))
        for d in range(cap, 0, -1):
            if blocks % d == 0:
                return d
        return 1

    tk = best_divisor(8) * 128                      # reduction tile, up to 1024 rows
    row_cap = 8 if blocks < 2 else min(8, blocks // 2)
    tm = best_divisor(row_cap) * 128                # row tile, up to 1024 rows
    return n_pad, tm, tk


def gin_kernel(a_ref, xw1_ref, b1_ref, w2_ref, b2_ref, o_ref, acc_ref, *, tk):
    k = pl.program_id(1)

    @pl.when(k == 0)
    def _init():
        acc_ref[...] = jnp.zeros_like(acc_ref)

    # Dominant stream: (A + I) @ (x @ W1).  A arrives as int8 counts and is cast
    # to bf16 on the VPU (hidden under DMA); MXU runs bf16 with f32 accumulation.
    a_bf = a_ref[...].astype(jnp.bfloat16)
    k_off = pl.multiple_of(k * tk, tk)
    xw1_k = xw1_ref[pl.ds(k_off, tk), :]            # resident RHS, slice K-tile
    acc_ref[...] += jnp.dot(a_bf, xw1_k, preferred_element_type=jnp.float32)

    @pl.when(k == pl.num_programs(1) - 1)
    def _finalize():
        # MLP tail: bias + ReLU in f32, second Linear on the MXU (bf16 in, f32 acc).
        h1 = jnp.maximum(acc_ref[...] + b1_ref[...], 0.0)
        out = jnp.dot(h1.astype(jnp.bfloat16), w2_ref[...],
                      preferred_element_type=jnp.float32) + b2_ref[...]
        o_ref[...] = out.astype(o_ref.dtype)


def gcn_forward(x, edge_index, w1, b1, w2, b2):
    """x: (N, Cin) f32, edge_index: (2, E) int, weights stored as (in, out)."""
    n, _ = x.shape
    hidden = w2.shape[1]
    H_PAD = 128                                     # lane-dense column padding

    n_pad, tm, tk = _pick_tiling(n)

    # Algebraic refactor (exact): out = ReLU((A+I) @ (x@W1) + b1) @ W2 + b2.
    xw1 = jnp.dot(x, w1)                            # (N, hidden) f32, tiny
    xw1_p = jnp.zeros((n_pad, H_PAD), jnp.bfloat16).at[:n, :hidden].set(
        xw1.astype(jnp.bfloat16))

    # Adjacency with folded self loops, built in ONE int8 scatter pass.
    # NOTE: int8 caps per-(dst, src) edge multiplicity at 127.
    nodes = jnp.arange(n, dtype=edge_index.dtype)
    src = jnp.concatenate([edge_index[0], nodes])
    dst = jnp.concatenate([edge_index[1], nodes])
    a = jnp.zeros((n_pad, n_pad), jnp.int8).at[dst, src].add(jnp.int8(1))

    # Lane-dense padded weights / biases (padded rows/cols are zero).
    w2_p = jnp.zeros((H_PAD, H_PAD), jnp.bfloat16).at[:hidden, :hidden].set(
        w2.astype(jnp.bfloat16))
    b1_p = jnp.zeros((1, H_PAD), jnp.float32).at[0, :hidden].set(b1)
    b2_p = jnp.zeros((1, H_PAD), jnp.float32).at[0, :hidden].set(b2)

    grid = (n_pad // tm, n_pad // tk)

    out = pl.pallas_call(
        functools.partial(gin_kernel, tk=tk),
        out_shape=jax.ShapeDtypeStruct((n_pad, H_PAD), jnp.float32),
        grid_spec=pltpu.PrefetchScalarGridSpec(
            num_scalar_prefetch=0,
            grid=grid,
            in_specs=[
                pl.BlockSpec((tm, tk), lambda i, k: (i, k)),          # A tile (int8)
                pl.BlockSpec((n_pad, H_PAD), lambda i, k: (0, 0)),    # xw1 (resident)
                pl.BlockSpec((1, H_PAD), lambda i, k: (0, 0)),        # b1  (resident)
                pl.BlockSpec((H_PAD, H_PAD), lambda i, k: (0, 0)),    # W2  (resident)
                pl.BlockSpec((1, H_PAD), lambda i, k: (0, 0)),        # b2  (resident)
            ],
            out_specs=pl.BlockSpec((tm, H_PAD), lambda i, k: (i, 0)),
            scratch_shapes=[pltpu.VMEM((tm, H_PAD), jnp.float32)],    # f32 accumulator
        ),
        compiler_params=pltpu.CompilerParams(
            dimension_semantics=("parallel", "arbitrary"),
        ),
    )(a, xw1_p, b1_p, w2_p, b2_p)

    return out[:n, :hidden]


def init_params(key, input_channels=65, hidden_channels=64):
    k1, k2, k3, k4 = jax.random.split(key, 4)
    # PyTorch-Linear-style uniform(-1/sqrt(fan_in), 1/sqrt(fan_in))
    lim1 = 1.0 / jnp.sqrt(jnp.float32(input_channels))
    lim2 = 1.0 / jnp.sqrt(jnp.float32(hidden_channels))
    w1 = jax.random.uniform(k1, (input_channels, hidden_channels), jnp.float32, -lim1, lim1)
    b1 = jax.random.uniform(k2, (hidden_channels,), jnp.float32, -lim1, lim1)
    w2 = jax.random.uniform(k3, (hidden_channels, hidden_channels), jnp.float32, -lim2, lim2)
    b2 = jax.random.uniform(k4, (hidden_channels,), jnp.float32, -lim2, lim2)
    return w1, b1, w2, b2


if __name__ == "__main__":
    key = jax.random.PRNGKey(0)
    k_x, k_e, k_p = jax.random.split(key, 3)

    num_nodes = 16
    num_edges = 40
    input_channels = 65
    hidden_channels = 64

    x = jax.random.normal(k_x, (num_nodes, input_channels), dtype=jnp.float32)
    edge_index = jax.random.randint(k_e, (2, num_edges), 0, num_nodes, dtype=jnp.int32)
    w1, b1, w2, b2 = init_params(k_p, input_channels, hidden_channels)

    out = gcn_forward(x, edge_index, w1, b1, w2, b2)
    out = jax.block_until_ready(out)
    assert out.shape == (num_nodes, hidden_channels)

    # Reference 1: same math with the same bf16 casts (tight check on the kernel).
    a_cnt = (jnp.zeros((num_nodes, num_nodes), jnp.float32)
             .at[edge_index[1], edge_index[0]].add(1.0)
             + jnp.eye(num_nodes, dtype=jnp.float32)).astype(jnp.bfloat16)
    xw1_ref = jnp.dot(x, w1).astype(jnp.bfloat16)
    acc_ref = jnp.dot(a_cnt, xw1_ref, preferred_element_type=jnp.float32)
    h1_ref = jnp.maximum(acc_ref + b1, 0.0)
    ref_bf = (jnp.dot(h1_ref.astype(jnp.bfloat16), w2.astype(jnp.bfloat16),
                      preferred_element_type=jnp.float32) + b2)
    assert jnp.allclose(out, ref_bf, atol=2e-2, rtol=2e-2)

    # Reference 2: full-f32 math (loose check that module semantics are preserved).
    a_f = jnp.zeros((num_nodes, num_nodes), jnp.float32).at[edge_index[1], edge_index[0]].add(1.0)
    h_f = x + a_f @ x
    ref_f32 = jnp.maximum(h_f @ w1 + b1, 0.0) @ w2 + b2
    assert jnp.allclose(out, ref_f32, atol=1e-1, rtol=1e-1)

    print("KERNEL_OK")
</pallas_src>

<mosaic_0001>
module attributes {stable_mosaic.version = 11 : i64} {
  func.func @gin_kernel(%arg0: i32, %arg1: i32, %arg2: memref<128x128xi8, #tpu.memory_space<vmem>>, %arg3: memref<128x128xbf16, #tpu.memory_space<vmem>>, %arg4: memref<1x128xf32, #tpu.memory_space<vmem>>, %arg5: memref<128x128xbf16, #tpu.memory_space<vmem>>, %arg6: memref<1x128xf32, #tpu.memory_space<vmem>>, %arg7: memref<128x128xf32, #tpu.memory_space<vmem>>, %arg8: memref<128x128xf32, #tpu.memory_space<vmem>>) attributes {dimension_semantics = [#tpu.dimension_semantics<parallel>, #tpu.dimension_semantics<arbitrary>], iteration_bounds = array<i64: 1, 1>, scalar_prefetch = 0 : i64, scratch_operands = 1 : i64, tpu.core_type = #tpu.core_type<tc>, window_params = [{transform_indices = @transform_0, window_bounds = array<i64: 128, 128>}, {pipeline_mode = #tpu.pipeline_mode<synchronous>, transform_indices = @transform_1, window_bounds = array<i64: 128, 128>}, {pipeline_mode = #tpu.pipeline_mode<synchronous>, transform_indices = @transform_2, window_bounds = array<i64: 1, 128>}, {pipeline_mode = #tpu.pipeline_mode<synchronous>, transform_indices = @transform_3, window_bounds = array<i64: 128, 128>}, {pipeline_mode = #tpu.pipeline_mode<synchronous>, transform_indices = @transform_4, window_bounds = array<i64: 1, 128>}, {transform_indices = @transform_5, window_bounds = array<i64: 128, 128>}]} {
    %c0_i32 = arith.constant 0 : i32
    %0 = arith.cmpi eq, %arg1, %c0_i32 : i32
    %1 = arith.extui %0 : i1 to i32
    %c0_i32_0 = arith.constant 0 : i32
    %2 = arith.cmpi ne, %1, %c0_i32_0 : i32
    scf.if %2 {
      %cst_9 = arith.constant 0.000000e+00 : f32
      %16 = vector.broadcast %cst_9 : f32 to vector<128x128xf32>
      %c0_10 = arith.constant 0 : index
      %c0_11 = arith.constant 0 : index
      %17 = vector.load %arg8[%c0_10, %c0_11] : memref<128x128xf32, #tpu.memory_space<vmem>>, vector<128x128xf32>
      tpu.vector_store %arg8[%c0_10, %c0_11], %16 {strides = array<i32>} : memref<128x128xf32, #tpu.memory_space<vmem>>, vector<128x128xf32>,
    } else {
    }
    %c0 = arith.constant 0 : index
    %c0_1 = arith.constant 0 : index
    %3 = vector.load %arg2[%c0, %c0_1] : memref<128x128xi8, #tpu.memory_space<vmem>>, vector<128x128xi8>
    %4 = arith.sitofp %3 : vector<128x128xi8> to vector<128x128xbf16>
    %c128_i32 = arith.constant 128 : i32
    %5 = arith.muli %arg1, %c128_i32 : i32
    %6 = tpu.assume_multiple %5, 128 : i32
    %7 = arith.index_cast %6 : i32 to index
    %c0_2 = arith.constant 0 : index
    %8 = vector.load %arg3[%7, %c0_2] : memref<128x128xbf16, #tpu.memory_space<vmem>>, vector<128x128xbf16>
    %c0_3 = arith.constant 0 : index
    %c0_4 = arith.constant 0 : index
    %9 = vector.load %arg8[%c0_3, %c0_4] : memref<128x128xf32, #tpu.memory_space<vmem>>, vector<128x128xf32>
    %cst = arith.constant dense<0.000000e+00> : vector<128x128xf32>
    %10 = tpu.matmul %4, %8, %cst {dimension_numbers = #tpu.dot_dimension_numbers<[1], [0], [0], [1], [0, 0, 1, 1], [], []>} : vector<128x128xbf16>, vector<128x128xbf16>, vector<128x128xf32> -> vector<128x128xf32>
    %11 = arith.addf %9, %10 : vector<128x128xf32>
    %c0_5 = arith.constant 0 : index
    %c0_6 = arith.constant 0 : index
    %12 = vector.load %arg8[%c0_5, %c0_6] : memref<128x128xf32, #tpu.memory_space<vmem>>, vector<128x128xf32>
    tpu.vector_store %arg8[%c0_5, %c0_6], %11 {strides = array<i32>} : memref<128x128xf32, #tpu.memory_space<vmem>>, vector<128x128xf32>,
    %c0_i32_7 = arith.constant 0 : i32
    %13 = arith.cmpi eq, %arg1, %c0_i32_7 : i32
    %14 = arith.extui %13 : i1 to i32
    %c0_i32_8 = arith.constant 0 : i32
    %15 = arith.cmpi ne, %14, %c0_i32_8 : i32
    scf.if %15 {
      %c0_9 = arith.constant 0 : index
      %c0_10 = arith.constant 0 : index
      %16 = vector.load %arg8[%c0_9, %c0_10] : memref<128x128xf32, #tpu.memory_space<vmem>>, vector<128x128xf32>
      %c0_11 = arith.constant 0 : index
      %c0_12 = arith.constant 0 : index
      %17 = vector.load %arg4[%c0_11, %c0_12] : memref<1x128xf32, #tpu.memory_space<vmem>>, vector<1x128xf32>
      %18 = vector.broadcast %17 : vector<1x128xf32> to vector<128x128xf32>
      %19 = arith.addf %16, %18 : vector<128x128xf32>
      %cst_13 = arith.constant 0.000000e+00 : f32
      %20 = vector.broadcast %cst_13 : f32 to vector<128x128xf32>
      %21 = arith.maximumf %19, %20 : vector<128x128xf32>
      %22 = arith.truncf %21 : vector<128x128xf32> to vector<128x128xbf16>
      %c0_14 = arith.constant 0 : index
      %c0_15 = arith.constant 0 : index
      %23 = vector.load %arg5[%c0_14, %c0_15] : memref<128x128xbf16, #tpu.memory_space<vmem>>, vector<128x128xbf16>
      %cst_16 = arith.constant dense<0.000000e+00> : vector<128x128xf32>
      %24 = tpu.matmul %22, %23, %cst_16 {dimension_numbers = #tpu.dot_dimension_numbers<[1], [0], [0], [1], [0, 0, 1, 1], [], []>} : vector<128x128xbf16>, vector<128x128xbf16>, vector<128x128xf32> -> vector<128x128xf32>
      %c0_17 = arith.constant 0 : index
      %c0_18 = arith.constant 0 : index
      %25 = vector.load %arg6[%c0_17, %c0_18] : memref<1x128xf32, #tpu.memory_space<vmem>>, vector<1x128xf32>
      %26 = vector.broadcast %25 : vector<1x128xf32> to vector<128x128xf32>
      %27 = arith.addf %24, %26 : vector<128x128xf32>
      %c0_19 = arith.constant 0 : index
      %c0_20 = arith.constant 0 : index
      %28 = vector.load %arg7[%c0_19, %c0_20] : memref<128x128xf32, #tpu.memory_space<vmem>>, vector<128x128xf32>
      tpu.vector_store %arg7[%c0_19, %c0_20], %27 {strides = array<i32>} : memref<128x128xf32, #tpu.memory_space<vmem>>, vector<128x128xf32>,
    } else {
    }
    return
  }
  func.func @transform_0(%arg0: i32, %arg1: i32) -> (i32, i32) {
    %c0_i32 = arith.constant 0 : i32
    return %arg0, %arg1 : i32, i32
  }
  func.func @transform_1(%arg0: i32, %arg1: i32) -> (i32, i32) {
    %c0_i32 = arith.constant 0 : i32
    %c0_i32_0 = arith.constant 0 : i32
    %c0_i32_1 = arith.constant 0 : i32
    return %c0_i32, %c0_i32_0 : i32, i32
  }
  func.func @transform_2(%arg0: i32, %arg1: i32) -> (i32, i32) {
    %c0_i32 = arith.constant 0 : i32
    %c0_i32_0 = arith.constant 0 : i32
    %c0_i32_1 = arith.constant 0 : i32
    return %c0_i32, %c0_i32_0 : i32, i32
  }
  func.func @transform_3(%arg0: i32, %arg1: i32) -> (i32, i32) {
    %c0_i32 = arith.constant 0 : i32
    %c0_i32_0 = arith.constant 0 : i32
    %c0_i32_1 = arith.constant 0 : i32
    return %c0_i32, %c0_i32_0 : i32, i32
  }
  func.func @transform_4(%arg0: i32, %arg1: i32) -> (i32, i32) {
    %c0_i32 = arith.constant 0 : i32
    %c0_i32_0 = arith.constant 0 : i32
    %c0_i32_1 = arith.constant 0 : i32
    return %c0_i32, %c0_i32_0 : i32, i32
  }
  func.func @transform_5(%arg0: i32, %arg1: i32) -> (i32, i32) {
    %c0_i32 = arith.constant 0 : i32
    %c0_i32_0 = arith.constant 0 : i32
    return %arg0, %c0_i32 : i32, i32
  }
}

</mosaic_0001>

<bundles_post_ra>
// kernel: tpu_custom_call.1
= control target key start
LH: loop header
LB: loop body
LE: loop exit
PB: predicated region body
PF: predicated region fallthrough
CT: control target
= control target key end

     0   :  { %10 = vsyncpa [#allocation4], 0  ;;  %s915_s0 = inlined_call_operand.hbm [shape: s8[128,128], index: 0, kind: input, shape index: {}]   ;;  %s916_s1 = inlined_call_operand.hbm [shape: bf16[128,128], index: 1, kind: input, shape index: {}]   ;;  %s917_s2 = inlined_call_operand.vmem [shape: f32[1,128], index: 2, kind: input, shape index: {}]   ;;  %s918_s3 = inlined_call_operand.hbm [shape: bf16[128,128], index: 3, kind: input, shape index: {}]   ;;  %s919_s4 = inlined_call_operand.vmem [shape: f32[1,128], index: 4, kind: input, shape index: {}]   ;;  %s920_s5 = inlined_call_operand.hbm [shape: f32[128,128], index: 5, kind: output, shape index: {}]  }
   0x1   :  { %11 = vsyncpa [#allocation7], 0 }
   0x2   :  { %12 = vsyncpa [#allocation5], 0  ;;  %s811_s18 = smov [#allocation6]   ;;  %s717_s22 = scalar_lea.hbm %s916_s1, 1024 }
   0x3   :  { %s30_s19 = sshll.u32 %s811_s18, 4  ;;  %p718_p0 = scmp.ne.s32.totalorder %s916_s1, %s717_s22  ;;  %s31_s19 = int_to_ptr.vmem [resolvable:$true] %s30_s19 }
   0x4   :  { %p721_p1 = scmp.lt.u32.totalorder %s717_s22, %s916_s1 }
   0x6   :  { %p723_p2 = pnand %p721_p1, %p718_p0 }
   0x8   :  { %726 = shalt.err (!%p723_p2)
}
   0x9   :  { %s727_s27 = scalar_lea.vmem %s31_s19, 1024  ;;  %p732_p4 = scmp.lt.s32.totalorder %s31_s19, %s31_s19 }
   0xa   :  { %p728_p3 = scmp.ne.s32.totalorder %s31_s19, %s727_s27  ;;  %p733_p5 = scmp.lt.s32.totalorder %s727_s27, %s727_s27 }
   0xc   :  { %p734_p6 = por %p733_p5, %p732_p4 }
   0xe   :  { %p735_p7 = pnand %p734_p6, %p728_p3 }
  0x10   :  { %738 = shalt.err (!%p735_p7)
}
  0x11   :  { %s812_s28 = smov 64   ;;  %s813_s29 = smov 4  }
  0x12   :  { %36 = dma.hbm_to_vmem [thread:$0]  %s916_s1, 1024, %s31_s19, [#allocation7], %s812_s28, %s812_s28, %s813_s29  }
  0x13   :  { %s814_s7 = smov [#allocation3]   ;;  %s739_s11 = scalar_lea.hbm %s915_s0, 512 }
  0x14   :  { %s18_s8 = sshll.u32 %s814_s7, 4  ;;  %p740_p8 = scmp.ne.s32.totalorder %s915_s0, %s739_s11  ;;  %s19_s8 = int_to_ptr.vmem [resolvable:$true] %s18_s8 }
  0x15   :  { %p743_p9 = scmp.lt.u32.totalorder %s739_s11, %s915_s0 }
  0x17   :  { %p745_p10 = pnand %p743_p9, %p740_p8 }
  0x19   :  { %748 = shalt.err (!%p745_p10)
}
  0x1a   :  { %s749_s16 = scalar_lea.vmem %s19_s8, 512  ;;  %p754_p12 = scmp.lt.s32.totalorder %s19_s8, %s19_s8 }
  0x1b   :  { %p750_p11 = scmp.ne.s32.totalorder %s19_s8, %s749_s16  ;;  %p755_p13 = scmp.lt.s32.totalorder %s749_s16, %s749_s16 }
  0x1d   :  { %p756_p0 = por %p755_p13, %p754_p12 }
  0x1f   :  { %p757_p1 = pnand %p756_p0, %p750_p11 }
  0x21   :  { %760 = shalt.err (!%p757_p1)
}
  0x22   :  { %s815_s1 = smov 128   ;;  %s816_s17 = smov 8  }
  0x23   :  { %24 = dma.hbm_to_vmem [thread:$0]  %s915_s0, 512, %s19_s8, [#allocation4], %s815_s1, %s815_s1, %s816_s17  }
  0x24   :  { %s817_s20 = smov [#allocation8]   ;;  %s761_s24 = scalar_lea.hbm %s918_s3, 1024 }
  0x25   :  { %s44_s21 = sshll.u32 %s817_s20, 4  ;;  %p762_p2 = scmp.ne.s32.totalorder %s918_s3, %s761_s24  ;;  %s45_s21 = int_to_ptr.vmem [resolvable:$true] %s44_s21 }
  0x26   :  { %p765_p3 = scmp.lt.u32.totalorder %s761_s24, %s918_s3 }
  0x28   :  { %p767_p4 = pnand %p765_p3, %p762_p2 }
  0x2a   :  { %770 = shalt.err (!%p767_p4)
}
  0x2b   :  { %s771_s6 = scalar_lea.vmem %s45_s21, 1024  ;;  %p776_p6 = scmp.lt.s32.totalorder %s45_s21, %s45_s21 }
  0x2c   :  { %p772_p5 = scmp.ne.s32.totalorder %s45_s21, %s771_s6  ;;  %p777_p7 = scmp.lt.s32.totalorder %s771_s6, %s771_s6 }
  0x2e   :  { %p778_p8 = por %p777_p7, %p776_p6 }
  0x30   :  { %p779_p9 = pnand %p778_p8, %p772_p5 }
  0x32   :  { %782 = shalt.err (!%p779_p9)
}
  0x33   :  { %50 = dma.hbm_to_vmem [thread:$0]  %s918_s3, 1024, %s45_s21, [#allocation7], %s812_s28, %s812_s28, %s813_s29  }
  0x34   :  { %805 = dma.done.wait [#allocation4], 512  }
  0x35   :  { %806 = vsyncadd [#allocation4], 4294966784 }
  0x36   :  { %807 = dma.done.wait [#allocation7], 2048  }
  0x37   :  { %808 = vsyncadd [#allocation7], 4294965248  ;;  %v701_v0 = vld [vmem:[#allocation6] sm:$0xff]   ;;  %v702_v1 = vld [vmem:[#allocation6 + $0x8] sm:$0xff]  }
  0x38   :  { %629 = vmatprep.subr.bf16.mxu0 %v701_v0  ;;  %v703_v2 = vld [vmem:[#allocation6 + $0x10] sm:$0xff]   ;;  %v704_v3 = vld [vmem:[#allocation6 + $0x18] sm:$0xff]   ;;  %v83_v4 = vld [vmem:[#allocation3] sm:$0xff] }
  0x39   :  { %630 = vmatpush3.bf16.msra.mxu0 %v701_v0  ;;  %v87_v5 = vunpack.c.l.s8.bf16 %v83_v4  ;;  %v709_v6 = vld [vmem:[#allocation8] sm:$0xff]   ;;  %v710_v7 = vld [vmem:[#allocation8 + $0x8] sm:$0xff]   ;;  %v711_v9 = vld [vmem:[#allocation8 + $0x10] sm:$0xff]   ;;  %v88_v17 = vunpack.c.h.s8.bf16 %v83_v4 }
  0x3a   :  { %631 = vmatprep.subr.bf16.mxu0 %v702_v1  ;;  %v705_v8 = vld [vmem:[#allocation6 + $0x20] sm:$0xff]   ;;  %661 = vmatprep.subr.bf16.mxu1 %v709_v6  ;;  %v706_v10 = vld [vmem:[#allocation6 + $0x28] sm:$0xff]   ;;  %v712_v11 = vld [vmem:[#allocation8 + $0x18] sm:$0xff]  }
  0x3b   :  { %645 = vmatprep.mubr.bf16.mxu0 %v87_v5  ;;  %662 = vmatpush3.bf16.msra.mxu1 %v709_v6  ;;  %v707_v12 = vld [vmem:[#allocation6 + $0x30] sm:$0xff]   ;;  %v713_v13 = vld [vmem:[#allocation8 + $0x20] sm:$0xff]   ;;  %v708_v14 = vld [vmem:[#allocation6 + $0x38] sm:$0xff]  }
  0x3c   :  { %663 = vmatprep.subr.bf16.mxu1 %v710_v7  ;;  %v714_v15 = vld [vmem:[#allocation8 + $0x28] sm:$0xff]   ;;  %v85_v19 = vld [vmem:[#allocation3 + $0x10] sm:$0xff]  ;;  %v86_v22 = vld [vmem:[#allocation3 + $0x18] sm:$0xff] }
  0x3d   :  { %632 = vmatpush3.bf16.msra.mxu0 %v702_v1  ;;  %v84_v16 = vld [vmem:[#allocation3 + $0x8] sm:$0xff]  ;;  %v91_v21 = vunpack.c.l.s8.bf16 %v85_v19  ;;  %v92_v23 = vunpack.c.h.s8.bf16 %v85_v19  ;;  %v93_v24 = vunpack.c.l.s8.bf16 %v86_v22  ;;  %v94_v25 = vunpack.c.h.s8.bf16 %v86_v22  ;;  %v715_v26 = vld [vmem:[#allocation8 + $0x30] sm:$0xff]   ;;  %v716_v27 = vld [vmem:[#allocation8 + $0x38] sm:$0xff]  }
  0x3e   :  { %633 = vmatprep.subr.bf16.mxu0 %v703_v2  ;;  %v89_v18 = vunpack.c.l.s8.bf16 %v84_v16  ;;  %v90_v20 = vunpack.c.h.s8.bf16 %v84_v16  ;;  %v587_v28 = vld [vmem:[%s917_s2] ss:$0 sm:$0xff] }
  0x3f   :  { %664 = vmatpush3.bf16.msra.mxu1 %v710_v7 }
  0x40   :  { %665 = vmatprep.subr.bf16.mxu1 %v711_v9 }
  0x41   :  { %634 = vmatpush3.bf16.msra.mxu0 %v703_v2 }
  0x42   :  { %635 = vmatprep.subr.bf16.mxu0 %v704_v3 }
  0x43   :  { %666 = vmatpush3.bf16.msra.mxu1 %v711_v9 }
  0x44   :  { %667 = vmatprep.subr.bf16.mxu1 %v712_v11 }
  0x45   :  { %636 = vmatpush3.bf16.msra.mxu0 %v704_v3 }
  0x46   :  { %637 = vmatprep.subr.bf16.mxu0 %v705_v8 }
  0x47   :  { %668 = vmatpush3.bf16.msra.mxu1 %v712_v11 }
  0x48   :  { %669 = vmatprep.subr.bf16.mxu1 %v713_v13 }
  0x49   :  { %638 = vmatpush3.bf16.msra.mxu0 %v705_v8 }
  0x4a   :  { %639 = vmatprep.subr.bf16.mxu0 %v706_v10 }
  0x4b   :  { %670 = vmatpush3.bf16.msra.mxu1 %v713_v13 }
  0x4c   :  { %671 = vmatprep.subr.bf16.mxu1 %v714_v15 }
  0x4d   :  { %640 = vmatpush3.bf16.msra.mxu0 %v706_v10 }
  0x4e   :  { %641 = vmatprep.subr.bf16.mxu0 %v707_v12 }
  0x4f   :  { %672 = vmatpush3.bf16.msra.mxu1 %v714_v15 }
  0x50   :  { %673 = vmatprep.subr.bf16.mxu1 %v715_v26 }
  0x51   :  { %642 = vmatpush3.bf16.msra.mxu0 %v707_v12 }
  0x52   :  { %643 = vmatprep.subr.bf16.mxu0 %v708_v14 }
  0x53   :  { %674 = vmatpush3.bf16.msra.mxu1 %v715_v26 }
  0x54   :  { %675 = vmatprep.subr.bf16.mxu1 %v716_v27 }
  0x55   :  { %644 = vmatpush3.bf16.msra.mxu0 %v708_v14 }
  0x57   :  { %676 = vmatpush3.bf16.msra.mxu1 %v716_v27 }
  0x58   :  { %646 = vmatmul.mubr.bf16.vlgmr.msra.gmra.mrb[0].mxu0 %v88_v17 }
  0x59   :  { %649 = vmatprep.mubr.bf16.mxu0 %v89_v18 }
  0x60   :  { %650 = vmatmul.mubr.bf16.gmra.mrb[4].mxu0 %v90_v20 }
  0x61   :  { %653 = vmatprep.mubr.bf16.mxu0 %v91_v21  ;;  %v588_v21 = vld [vmem:[%s919_s4] ss:$0 sm:$0xff]  ;;  %s818_s4 = smov [#allocation9]  }
  0x62   :  { %s564_s8 = sshll.u32 %s818_s4, 4  ;;  %s565_s8 = int_to_ptr.vmem [resolvable:$true] %s564_s8 }
  0x63   :  { %s783_s9 = scalar_lea.vmem %s565_s8, 2048  ;;  %p788_p11 = scmp.lt.s32.totalorder %s565_s8, %s565_s8 }
  0x64   :  { %p784_p10 = scmp.ne.s32.totalorder %s565_s8, %s783_s9  ;;  %p789_p12 = scmp.lt.s32.totalorder %s783_s9, %s783_s9 }
  0x66   :  { %p790_p13 = por %p789_p12, %p788_p11 }
  0x68   :  { %654 = vmatmul.mubr.bf16.gmra.mrb[8].mxu0 %v92_v23  ;;  %p791_p0 = pnand %p790_p13, %p784_p10 }
  0x69   :  { %657 = vmatprep.mubr.bf16.mxu0 %v93_v24 }
  0x70   :  { %658 = vmatmul.mubr.bf16.gmra.mrb[12].mxu0 %v94_v25 }
 0x12b   :  { %v647_v29 = vpop.f32.mrb[0].mxu0 }
 0x12c   :  { %v337_v30 = vadd.f32 %v647_v29, %v587_v28  ;;  %v214_v31 = vpop.f32.mrb[1].mxu0 }
 0x12d   :  { %v335_v32 = vadd.f32 %v587_v28, %v214_v31  ;;  %v648_v33 = vpop.f32.mrb[2].mxu0 }
 0x12e   :  { %v338_v34 = vadd.f32 %v648_v33, %v587_v28  ;;  %v217_v35 = vpop.f32.mrb[3].mxu0  ;;  %v353_v37 = vmax.f32 %v337_v30, 0.0 }
 0x12f   :  { %v336_v36 = vadd.f32 %v587_v28, %v217_v35  ;;  %v351_v39 = vmax.f32 %v335_v32, 0.0 }
 0x130   :  { %v354_v38 = vmax.f32 %v338_v34, 0.0 }
 0x131   :  { %v352_v40 = vmax.f32 %v336_v36, 0.0 }
 0x132   :  { %v368_v41 = vpack.c.bf16 %v354_v38, %v353_v37 }
 0x133   :  { %v651_v42 = vpop.f32.mrb[4].mxu0  ;;  %v367_v43 = vpack.c.bf16 %v352_v40, %v351_v39 }
 0x134   :  { %v341_v44 = vadd.f32 %v651_v42, %v587_v28  ;;  %v230_v45 = vpop.f32.mrb[5].mxu0 }
 0x135   :  { %v339_v46 = vadd.f32 %v587_v28, %v230_v45  ;;  %v652_v47 = vpop.f32.mrb[6].mxu0  ;;  %677 = vmatprep.mubr.bf16.mxu1 %v367_v43 }
 0x136   :  { %v342_v48 = vadd.f32 %v652_v47, %v587_v28  ;;  %v233_v49 = vpop.f32.mrb[7].mxu0  ;;  %678 = vmatmul.mubr.bf16.vlgmr.msra.gmra.mrb[0].mxu1 %v368_v41  ;;  %v357_v51 = vmax.f32 %v341_v44, 0.0 }
 0x137   :  { %v340_v50 = vadd.f32 %v587_v28, %v233_v49  ;;  %v355_v53 = vmax.f32 %v339_v46, 0.0 }
 0x138   :  { %v358_v52 = vmax.f32 %v342_v48, 0.0 }
 0x139   :  { %v356_v54 = vmax.f32 %v340_v50, 0.0 }
 0x13a   :  { %v370_v55 = vpack.c.bf16 %v358_v52, %v357_v51 }
 0x13b   :  { %v369_v56 = vpack.c.bf16 %v356_v54, %v355_v53  ;;  %v655_v57 = vpop.f32.mrb[8].mxu0 }
 0x13c   :  { %v345_v58 = vadd.f32 %v655_v57, %v587_v28  ;;  %v246_v59 = vpop.f32.mrb[9].mxu0 }
 0x13d   :  { %v343_v60 = vadd.f32 %v587_v28, %v246_v59  ;;  %v656_v61 = vpop.f32.mrb[10].mxu0  ;;  %681 = vmatprep.mubr.bf16.mxu1 %v369_v56 }
 0x13e   :  { %v346_v62 = vadd.f32 %v656_v61, %v587_v28  ;;  %v249_v63 = vpop.f32.mrb[11].mxu0  ;;  %682 = vmatmul.mubr.bf16.gmra.mrb[4].mxu1 %v370_v55  ;;  %v361_v1 = vmax.f32 %v345_v58, 0.0 }
 0x13f   :  { %v344_v0 = vadd.f32 %v587_v28, %v249_v63  ;;  %v359_v3 = vmax.f32 %v343_v60, 0.0 }
 0x140   :  { %v362_v2 = vmax.f32 %v346_v62, 0.0 }
 0x141   :  { %v360_v4 = vmax.f32 %v344_v0, 0.0 }
 0x142   :  { %v372_v5 = vpack.c.bf16 %v362_v2, %v361_v1 }
 0x143   :  { %v371_v6 = vpack.c.bf16 %v360_v4, %v359_v3  ;;  %v659_v7 = vpop.f32.mrb[12].mxu0 }
 0x144   :  { %v349_v8 = vadd.f32 %v659_v7, %v587_v28  ;;  %v262_v9 = vpop.f32.mrb[13].mxu0 }
 0x145   :  { %v347_v10 = vadd.f32 %v587_v28, %v262_v9  ;;  %v660_v11 = vpop.f32.mrb[14].mxu0  ;;  %685 = vmatprep.mubr.bf16.mxu1 %v371_v6 }
 0x146   :  { %v350_v12 = vadd.f32 %v660_v11, %v587_v28  ;;  %v265_v13 = vpop.f32.mrb[15].mxu0  ;;  %686 = vmatmul.mubr.bf16.gmra.mrb[8].mxu1 %v372_v5  ;;  %v365_v15 = vmax.f32 %v349_v8, 0.0 }
 0x147   :  { %v348_v14 = vadd.f32 %v587_v28, %v265_v13  ;;  %v363_v17 = vmax.f32 %v347_v10, 0.0 }
 0x148   :  { %v366_v16 = vmax.f32 %v350_v12, 0.0 }
 0x149   :  { %v364_v18 = vmax.f32 %v348_v14, 0.0 }
 0x14a   :  { %v374_v19 = vpack.c.bf16 %v366_v16, %v365_v15 }
 0x14b   :  { %v373_v20 = vpack.c.bf16 %v364_v18, %v363_v17 }
 0x14d   :  { %689 = vmatprep.mubr.bf16.mxu1 %v373_v20 }
 0x14e   :  { %690 = vmatmul.mubr.bf16.gmra.mrb[12].mxu1 %v374_v19 }
 0x209   :  { %v679_v22 = vpop.f32.mrb[0].mxu1 }
 0x20a   :  { %v489_v23 = vadd.f32 %v679_v22, %v588_v21  ;;  %v480_v24 = vpop.f32.mrb[1].mxu1 }
 0x20b   :  { %v481_v25 = vadd.f32 %v588_v21, %v480_v24  ;;  %v680_v26 = vpop.f32.mrb[2].mxu1 }
 0x20c   :  { %545 = vst [vmem:[#allocation9 + $0x10] sm:$0xff] %v489_v23  ;;  %v492_v27 = vadd.f32 %v680_v26, %v588_v21  ;;  %v483_v28 = vpop.f32.mrb[3].mxu1 }
 0x20d   :  { %543 = vst [vmem:[#allocation9] sm:$0xff] %v481_v25  ;;  %v484_v29 = vadd.f32 %v588_v21, %v483_v28 }
 0x20e   :  { %546 = vst [vmem:[#allocation9 + $0x18] sm:$0xff] %v492_v27 }
 0x20f   :  { %544 = vst [vmem:[#allocation9 + $0x8] sm:$0xff] %v484_v29 }
 0x211   :  { %v683_v30 = vpop.f32.mrb[4].mxu1 }
 0x212   :  { %v505_v31 = vadd.f32 %v683_v30, %v588_v21  ;;  %v496_v32 = vpop.f32.mrb[5].mxu1 }
 0x213   :  { %v497_v33 = vadd.f32 %v588_v21, %v496_v32  ;;  %v684_v34 = vpop.f32.mrb[6].mxu1 }
 0x214   :  { %549 = vst [vmem:[#allocation9 + $0x30] sm:$0xff] %v505_v31  ;;  %v508_v35 = vadd.f32 %v684_v34, %v588_v21  ;;  %v499_v36 = vpop.f32.mrb[7].mxu1 }
 0x215   :  { %547 = vst [vmem:[#allocation9 + $0x20] sm:$0xff] %v497_v33  ;;  %v500_v37 = vadd.f32 %v588_v21, %v499_v36 }
 0x216   :  { %550 = vst [vmem:[#allocation9 + $0x38] sm:$0xff] %v508_v35 }
 0x217   :  { %548 = vst [vmem:[#allocation9 + $0x28] sm:$0xff] %v500_v37 }
 0x219   :  { %v687_v38 = vpop.f32.mrb[8].mxu1 }
 0x21a   :  { %v521_v39 = vadd.f32 %v687_v38, %v588_v21  ;;  %v512_v40 = vpop.f32.mrb[9].mxu1 }
 0x21b   :  { %v513_v41 = vadd.f32 %v588_v21, %v512_v40  ;;  %v688_v42 = vpop.f32.mrb[10].mxu1 }
 0x21c   :  { %553 = vst [vmem:[#allocation9 + $0x50] sm:$0xff] %v521_v39  ;;  %v524_v43 = vadd.f32 %v688_v42, %v588_v21  ;;  %v515_v44 = vpop.f32.mrb[11].mxu1 }
 0x21d   :  { %551 = vst [vmem:[#allocation9 + $0x40] sm:$0xff] %v513_v41  ;;  %v516_v45 = vadd.f32 %v588_v21, %v515_v44 }
 0x21e   :  { %554 = vst [vmem:[#allocation9 + $0x58] sm:$0xff] %v524_v43 }
 0x21f   :  { %552 = vst [vmem:[#allocation9 + $0x48] sm:$0xff] %v516_v45 }
 0x221   :  { %v691_v46 = vpop.f32.mrb[12].mxu1 }
 0x222   :  { %v537_v47 = vadd.f32 %v691_v46, %v588_v21  ;;  %v528_v48 = vpop.f32.mrb[13].mxu1 }
 0x223   :  { %v529_v49 = vadd.f32 %v588_v21, %v528_v48  ;;  %v692_v50 = vpop.f32.mrb[14].mxu1 }
 0x224   :  { %557 = vst [vmem:[#allocation9 + $0x70] sm:$0xff] %v537_v47  ;;  %v540_v51 = vadd.f32 %v692_v50, %v588_v21  ;;  %v531_v52 = vpop.f32.mrb[15].mxu1 }
 0x225   :  { %555 = vst [vmem:[#allocation9 + $0x60] sm:$0xff] %v529_v49  ;;  %v532_v53 = vadd.f32 %v588_v21, %v531_v52 }
 0x226   :  { %558 = vst [vmem:[#allocation9 + $0x78] sm:$0xff] %v540_v51 }
 0x227   :  { %556 = vst [vmem:[#allocation9 + $0x68] sm:$0xff] %v532_v53 }
 0x228   :  { %794 = shalt.err (!%p791_p0)
}
 0x229   :  { %s795_s12 = scalar_lea.hbm %s920_s5, 2048 }
 0x22a   :  { %p796_p1 = scmp.ne.s32.totalorder %s920_s5, %s795_s12  ;;  %p799_p2 = scmp.lt.u32.totalorder %s795_s12, %s920_s5 }
 0x22c   :  { %p801_p3 = pnand %p799_p2, %p796_p1 }
 0x22e   :  { %804 = shalt.err (!%p801_p3)
}
 0x22f   :  { %570 = dma.vmem_to_hbm [thread:$0]  %s565_s8, 2048, %s920_s5, [#allocation5], %s815_s1, %s815_s1, %s816_s17  }
 0x230   :  { %809 = dma.done.wait [#allocation5], 2048  }
 0x231   :  { %810 = vsyncadd [#allocation5], 4294965248 }
 0x232   :  { %574 = vsyncpa [#allocation4], 1 }
 0x233   :  { %575 = vsyncpa [#allocation7], 1 }
 0x234   :  { %576 = vsyncpa [#allocation5], 1 }

</bundles_post_ra>
